<compile_context>
chip_gen: v5e
topology: v5e:2x2
jax: 0.10.0
libtpu: 0.0.40
codegen_flags: <defaults>
</compile_context>

<pallas_src>
import functools

import numpy as np
import jax
import jax.numpy as jnp
from jax.experimental import pallas as pl
from jax.experimental.pallas import tpu as pltpu


def _round_up(x, m):
    return (x + m - 1) // m * m


def _vcdn_kernel(x_ref, e_ref, w1_ref, b1_ref, w2_ref, b2_ref, out_ref, *,
                 num_view, num_cls):
    V, C = num_view, num_cls

    # (Bt, V*C) sigmoid, kept in f32 (v5e has no bf16 VPU/EUP datapath).
    s = jax.nn.sigmoid(x_ref[...])

    # Lane-dense Kronecker feature: rep_v[b, j] = s[b, v*C + digit_v(j)],
    # produced by a tiny 0/1 expansion matmul per view, then a running f32
    # product.  feat is built directly in row-major (Bt, C**V) layout --
    # no padded (Bt, C, ..., C) intermediate and no relayout reshape.
    feat = None
    for v in range(V):                      # V is static -> unrolled at trace time
        sv = s[:, v * C:(v + 1) * C]        # (Bt, C) f32
        rep = jnp.dot(sv, e_ref[v], preferred_element_type=jnp.float32)
        feat = rep if feat is None else feat * rep

    # Linear -> LeakyReLU(0.25) -> Linear.  Weights arrive in the matmul dtype
    # (bf16 by default); activations are cast only at the dot inputs and the
    # MXU accumulates in f32.  Hidden/output lanes are zero-padded to 128
    # (padded weight/bias columns are 0, so padded lanes stay exactly 0) ->
    # full unmasked 128-lane stores and full-width MXU passes.
    h = jnp.dot(feat.astype(w1_ref.dtype), w1_ref[...],
                preferred_element_type=jnp.float32) + b1_ref[...]
    h = jnp.where(h > 0, h, 0.25 * h)
    out = jnp.dot(h.astype(w2_ref.dtype), w2_ref[...],
                  preferred_element_type=jnp.float32) + b2_ref[...]
    out_ref[...] = out.astype(out_ref.dtype)


def vcdn_forward(views, w1, b1, w2, b2, *, b_tile=512, matmul_dtype=jnp.bfloat16):
    """views: (V, B, C) logits.  w1: (C**V, H), b1: (H,), w2: (H, C), b2: (C,).

    Returns (B, C) logits in float32.
    """
    V, B, C = views.shape
    d_in, H = w1.shape
    assert d_in == C ** V, "w1 in_features must equal num_cls**num_view"

    f32 = jnp.float32
    # Flatten to one contiguous row-major tile: x2d[b, v*C + c] = views[v, b, c].
    x2d = jnp.transpose(views.astype(f32), (1, 0, 2)).reshape(B, V * C)

    # Digit-expansion matrices: E[v, i, j] = 1 iff the v-th row-major digit of
    # j (base C) equals i.  Grid-invariant, tiny, kept in f32 so rep_v carries
    # the exact sigmoid values.
    e_np = np.zeros((V, C, d_in), np.float32)
    cols = np.arange(d_in)
    for v in range(V):
        digits = (cols // (C ** (V - 1 - v))) % C
        e_np[v, digits, cols] = 1.0
    e_mat = jnp.asarray(e_np)

    # Lane-dense weight layout: pad the output dims of both linears to 128 and
    # store the weights in the matmul dtype (bf16 halves DMA bytes + VMEM).
    h_pad = _round_up(H, 128)
    c_pad = _round_up(C, 128)
    w1_p = jnp.zeros((d_in, h_pad), f32).at[:, :H].set(w1.astype(f32)).astype(matmul_dtype)
    b1_p = jnp.zeros((1, h_pad), f32).at[:, :H].set(b1.astype(f32))
    w2_p = jnp.zeros((h_pad, c_pad), f32).at[:H, :C].set(w2.astype(f32)).astype(matmul_dtype)
    b2_p = jnp.zeros((1, c_pad), f32).at[:, :C].set(b2.astype(f32))

    # Batch tiling: big tiles to amortize per-grid-step overhead, but keep at
    # least 2 grid steps when the batch allows it so the "parallel" axis can
    # shard across v7x's two TensorCores (v5e/v6e are single-TC; unaffected).
    bt = min(b_tile, _round_up(B, 8))
    if B <= bt and B >= 16:
        bt = _round_up((B + 1) // 2, 8)
    b_full = _round_up(B, bt)
    if b_full != B:
        x2d = jnp.pad(x2d, ((0, b_full - B), (0, 0)))
    nb = b_full // bt

    kernel = functools.partial(_vcdn_kernel, num_view=V, num_cls=C)

    grid_spec = pltpu.PrefetchScalarGridSpec(
        num_scalar_prefetch=0,
        grid=(nb,),
        in_specs=[
            # Per-tile activations: one dense (bt, V*C) row-major block.
            pl.BlockSpec((bt, V * C), lambda i: (i, 0)),
            # Grid-invariant constants (constant index maps -> VMEM-resident
            # across all batch tiles).
            # NOTE: at realistic d_in = C**V, additionally mark the weight
            # specs pipeline_mode=pl.Buffered(1) and add a K-reduction grid
            # axis over d_in (tk multiple of 256 on v6e/v7x, 128 on v5e) to
            # stay within v7x's 64 MiB VMEM.  Not needed at these sizes.
            pl.BlockSpec((V, C, d_in), lambda i: (0, 0, 0)),
            pl.BlockSpec((d_in, h_pad), lambda i: (0, 0)),
            pl.BlockSpec((1, h_pad), lambda i: (0, 0)),
            pl.BlockSpec((h_pad, c_pad), lambda i: (0, 0)),
            pl.BlockSpec((1, c_pad), lambda i: (0, 0)),
        ],
        out_specs=pl.BlockSpec((bt, c_pad), lambda i: (i, 0)),
    )

    w_item = jnp.dtype(matmul_dtype).itemsize
    flops = (2 * b_full * (V * C * d_in + d_in * h_pad + h_pad * c_pad)
             + b_full * d_in * (V - 1))
    transcendentals = b_full * V * C  # sigmoids
    bytes_accessed = (b_full * V * C * 4 + V * C * d_in * 4
                      + d_in * h_pad * w_item + h_pad * c_pad * w_item
                      + (h_pad + c_pad) * 4 + b_full * c_pad * 4)

    # Explicit VMEM budget: all resident blocks (double-buffered) + live
    # intermediates + margin, floored at the 32 MiB default so it is never
    # tighter than the compiler default.
    block_bytes = (bt * V * C * 4 + V * C * d_in * 4 + d_in * h_pad * w_item
                   + h_pad * 4 + h_pad * c_pad * w_item + c_pad * 4
                   + bt * c_pad * 4)
    scratch_bytes = 2 * bt * (d_in + h_pad) * 4
    vmem_limit = min(100 * 1024 * 1024,
                     max(32 * 1024 * 1024, 2 * block_bytes + scratch_bytes + (1 << 20)))

    out_padded = pl.pallas_call(
        kernel,
        out_shape=jax.ShapeDtypeStruct((b_full, c_pad), jnp.float32),
        grid_spec=grid_spec,
        compiler_params=pltpu.CompilerParams(
            dimension_semantics=("parallel",),   # batch tiles are independent
            vmem_limit_bytes=int(vmem_limit),
        ),
        cost_estimate=pl.CostEstimate(
            flops=int(flops),
            transcendentals=int(transcendentals),
            bytes_accessed=int(bytes_accessed),
        ),
    )(x2d, e_mat, w1_p, b1_p, w2_p, b2_p)

    return out_padded[:B, :C]


def make_params(num_view, num_cls, hvcdn_dim, key):
    """Xavier-normal weights (zero bias), stored as (in, out) float32."""
    d_in = num_cls ** num_view
    k1, k2 = jax.random.split(key)
    std1 = float(np.sqrt(2.0 / (d_in + hvcdn_dim)))
    std2 = float(np.sqrt(2.0 / (hvcdn_dim + num_cls)))
    w1 = std1 * jax.random.normal(k1, (d_in, hvcdn_dim), dtype=jnp.float32)
    b1 = jnp.zeros((hvcdn_dim,), dtype=jnp.float32)
    w2 = std2 * jax.random.normal(k2, (hvcdn_dim, num_cls), dtype=jnp.float32)
    b2 = jnp.zeros((num_cls,), dtype=jnp.float32)
    return w1, b1, w2, b2


def vcdn_reference(views, w1, b1, w2, b2):
    """Pure-JAX reference mirroring the PyTorch forward exactly."""
    V, B, C = views.shape
    s = [jax.nn.sigmoid(views[i]) for i in range(V)]
    x = jnp.matmul(s[0][:, :, None], s[1][:, None, :]).reshape(B, C * C, 1)
    for i in range(2, V):
        x = jnp.matmul(x, s[i][:, None, :]).reshape(B, C ** (i + 1), 1)
    feat = x.reshape(B, C ** V)
    h = feat @ w1 + b1
    h = jnp.where(h > 0, h, 0.25 * h)
    return h @ w2 + b2


if __name__ == "__main__":
    # Small model dims (as implied by the module), with enough batch per call
    # (256 rows -> two 128-row "parallel" grid tiles) to give the MXU real work.
    num_view, num_cls, hvcdn_dim, batch = 3, 4, 32, 256

    key = jax.random.PRNGKey(0)
    k_views, k_params = jax.random.split(key)

    # Stacked per-view logits: (V, B, num_cls)
    views = jax.random.normal(k_views, (num_view, batch, num_cls), dtype=jnp.float32)
    w1, b1, w2, b2 = make_params(num_view, num_cls, hvcdn_dim, k_params)

    ref = jax.block_until_ready(vcdn_reference(views, w1, b1, w2, b2))

    # f32 matmul path: semantics must match the reference at f32 accuracy
    # (small tolerance headroom for the MXU's f32 pass decomposition).
    out_f32 = jax.block_until_ready(
        vcdn_forward(views, w1, b1, w2, b2, matmul_dtype=jnp.float32))
    assert out_f32.shape == (batch, num_cls)
    np.testing.assert_allclose(np.asarray(out_f32), np.asarray(ref),
                               rtol=1e-4, atol=1e-4)

    # Default bf16-MXU path (weights + dot inputs bf16, f32 accumulation):
    # same semantics at bf16 matmul precision.
    out_bf16 = jax.block_until_ready(vcdn_forward(views, w1, b1, w2, b2))
    assert out_bf16.shape == (batch, num_cls)
    np.testing.assert_allclose(np.asarray(out_bf16), np.asarray(ref),
                               rtol=3e-2, atol=3e-2)

    print("KERNEL_OK")
</pallas_src>

<mosaic_0001>
module attributes {stable_mosaic.version = 11 : i64} {
  func.func @_vcdn_kernel(%arg0: i32, %arg1: memref<128x12xf32, #tpu.memory_space<vmem>>, %arg2: memref<3x4x64xf32, #tpu.memory_space<vmem>>, %arg3: memref<64x128xf32, #tpu.memory_space<vmem>>, %arg4: memref<1x128xf32, #tpu.memory_space<vmem>>, %arg5: memref<128x128xf32, #tpu.memory_space<vmem>>, %arg6: memref<1x128xf32, #tpu.memory_space<vmem>>, %arg7: memref<128x128xf32, #tpu.memory_space<vmem>>) attributes {dimension_semantics = [#tpu.dimension_semantics<parallel>], iteration_bounds = array<i64: 2>, scalar_prefetch = 0 : i64, scratch_operands = 0 : i64, tpu.core_type = #tpu.core_type<tc>, window_params = [{transform_indices = @transform_0, window_bounds = array<i64: 128, 12>}, {pipeline_mode = #tpu.pipeline_mode<synchronous>, transform_indices = @transform_1, window_bounds = array<i64: 3, 4, 64>}, {pipeline_mode = #tpu.pipeline_mode<synchronous>, transform_indices = @transform_2, window_bounds = array<i64: 64, 128>}, {pipeline_mode = #tpu.pipeline_mode<synchronous>, transform_indices = @transform_3, window_bounds = array<i64: 1, 128>}, {pipeline_mode = #tpu.pipeline_mode<synchronous>, transform_indices = @transform_4, window_bounds = array<i64: 128, 128>}, {pipeline_mode = #tpu.pipeline_mode<synchronous>, transform_indices = @transform_5, window_bounds = array<i64: 1, 128>}, {transform_indices = @transform_6, window_bounds = array<i64: 128, 128>}]} {
    %c0 = arith.constant 0 : index
    %c0_0 = arith.constant 0 : index
    %0 = vector.load %arg1[%c0, %c0_0] : memref<128x12xf32, #tpu.memory_space<vmem>>, vector<128x12xf32>
    %1 = arith.negf %0 : vector<128x12xf32>
    %2 = math.exp %1 : vector<128x12xf32>
    %cst = arith.constant 1.000000e+00 : f32
    %3 = vector.broadcast %cst : f32 to vector<128x12xf32>
    %4 = arith.addf %3, %2 : vector<128x12xf32>
    %5 = arith.divf %3, %4 : vector<128x12xf32>
    %6 = vector.extract_strided_slice %5 {offsets = [0, 0], sizes = [128, 4], strides = [1, 1]} : vector<128x12xf32> to vector<128x4xf32>
    %c0_1 = arith.constant 0 : index
    %c0_2 = arith.constant 0 : index
    %c0_3 = arith.constant 0 : index
    %7 = vector.load %arg2[%c0_1, %c0_2, %c0_3] : memref<3x4x64xf32, #tpu.memory_space<vmem>>, vector<1x4x64xf32>
    %8 = vector.shape_cast %7 : vector<1x4x64xf32> to vector<4x64xf32>
    %cst_4 = arith.constant dense<0.000000e+00> : vector<128x64xf32>
    %9 = tpu.matmul %6, %8, %cst_4 {dimension_numbers = #tpu.dot_dimension_numbers<[1], [0], [0], [1], [0, 0, 1, 1], [], []>} : vector<128x4xf32>, vector<4x64xf32>, vector<128x64xf32> -> vector<128x64xf32>
    %10 = vector.extract_strided_slice %5 {offsets = [0, 4], sizes = [128, 4], strides = [1, 1]} : vector<128x12xf32> to vector<128x4xf32>
    %c1 = arith.constant 1 : index
    %c0_5 = arith.constant 0 : index
    %c0_6 = arith.constant 0 : index
    %11 = vector.load %arg2[%c1, %c0_5, %c0_6] : memref<3x4x64xf32, #tpu.memory_space<vmem>>, vector<1x4x64xf32>
    %12 = vector.shape_cast %11 : vector<1x4x64xf32> to vector<4x64xf32>
    %cst_7 = arith.constant dense<0.000000e+00> : vector<128x64xf32>
    %13 = tpu.matmul %10, %12, %cst_7 {dimension_numbers = #tpu.dot_dimension_numbers<[1], [0], [0], [1], [0, 0, 1, 1], [], []>} : vector<128x4xf32>, vector<4x64xf32>, vector<128x64xf32> -> vector<128x64xf32>
    %14 = arith.mulf %9, %13 : vector<128x64xf32>
    %15 = vector.extract_strided_slice %5 {offsets = [0, 8], sizes = [128, 4], strides = [1, 1]} : vector<128x12xf32> to vector<128x4xf32>
    %c2 = arith.constant 2 : index
    %c0_8 = arith.constant 0 : index
    %c0_9 = arith.constant 0 : index
    %16 = vector.load %arg2[%c2, %c0_8, %c0_9] : memref<3x4x64xf32, #tpu.memory_space<vmem>>, vector<1x4x64xf32>
    %17 = vector.shape_cast %16 : vector<1x4x64xf32> to vector<4x64xf32>
    %cst_10 = arith.constant dense<0.000000e+00> : vector<128x64xf32>
    %18 = tpu.matmul %15, %17, %cst_10 {dimension_numbers = #tpu.dot_dimension_numbers<[1], [0], [0], [1], [0, 0, 1, 1], [], []>} : vector<128x4xf32>, vector<4x64xf32>, vector<128x64xf32> -> vector<128x64xf32>
    %19 = arith.mulf %14, %18 : vector<128x64xf32>
    %c0_11 = arith.constant 0 : index
    %c0_12 = arith.constant 0 : index
    %20 = vector.load %arg3[%c0_11, %c0_12] : memref<64x128xf32, #tpu.memory_space<vmem>>, vector<64x128xf32>
    %cst_13 = arith.constant dense<0.000000e+00> : vector<128x128xf32>
    %21 = tpu.matmul %19, %20, %cst_13 {dimension_numbers = #tpu.dot_dimension_numbers<[1], [0], [0], [1], [0, 0, 1, 1], [], []>} : vector<128x64xf32>, vector<64x128xf32>, vector<128x128xf32> -> vector<128x128xf32>
    %c0_14 = arith.constant 0 : index
    %c0_15 = arith.constant 0 : index
    %22 = vector.load %arg4[%c0_14, %c0_15] : memref<1x128xf32, #tpu.memory_space<vmem>>, vector<1x128xf32>
    %23 = vector.broadcast %22 : vector<1x128xf32> to vector<128x128xf32>
    %24 = arith.addf %21, %23 : vector<128x128xf32>
    %cst_16 = arith.constant 0.000000e+00 : f32
    %25 = vector.broadcast %cst_16 : f32 to vector<128x128xf32>
    %26 = arith.cmpf ogt, %24, %25 : vector<128x128xf32>
    %cst_17 = arith.constant 2.500000e-01 : f32
    %27 = vector.broadcast %cst_17 : f32 to vector<128x128xf32>
    %28 = arith.mulf %27, %24 : vector<128x128xf32>
    %29 = arith.select %26, %24, %28 : vector<128x128xi1>, vector<128x128xf32>
    %c0_18 = arith.constant 0 : index
    %c0_19 = arith.constant 0 : index
    %30 = vector.load %arg5[%c0_18, %c0_19] : memref<128x128xf32, #tpu.memory_space<vmem>>, vector<128x128xf32>
    %cst_20 = arith.constant dense<0.000000e+00> : vector<128x128xf32>
    %31 = tpu.matmul %29, %30, %cst_20 {dimension_numbers = #tpu.dot_dimension_numbers<[1], [0], [0], [1], [0, 0, 1, 1], [], []>} : vector<128x128xf32>, vector<128x128xf32>, vector<128x128xf32> -> vector<128x128xf32>
    %c0_21 = arith.constant 0 : index
    %c0_22 = arith.constant 0 : index
    %32 = vector.load %arg6[%c0_21, %c0_22] : memref<1x128xf32, #tpu.memory_space<vmem>>, vector<1x128xf32>
    %33 = vector.broadcast %32 : vector<1x128xf32> to vector<128x128xf32>
    %34 = arith.addf %31, %33 : vector<128x128xf32>
    %c0_23 = arith.constant 0 : index
    %c0_24 = arith.constant 0 : index
    %35 = vector.load %arg7[%c0_23, %c0_24] : memref<128x128xf32, #tpu.memory_space<vmem>>, vector<128x128xf32>
    tpu.vector_store %arg7[%c0_23, %c0_24], %34 {strides = array<i32>} : memref<128x128xf32, #tpu.memory_space<vmem>>, vector<128x128xf32>,
    return
  }
  func.func @transform_0(%arg0: i32) -> (i32, i32) {
    %c0_i32 = arith.constant 0 : i32
    %c0_i32_0 = arith.constant 0 : i32
    return %arg0, %c0_i32 : i32, i32
  }
  func.func @transform_1(%arg0: i32) -> (i32, i32, i32) {
    %c0_i32 = arith.constant 0 : i32
    %c0_i32_0 = arith.constant 0 : i32
    %c0_i32_1 = arith.constant 0 : i32
    %c0_i32_2 = arith.constant 0 : i32
    return %c0_i32, %c0_i32_0, %c0_i32_1 : i32, i32, i32
  }
  func.func @transform_2(%arg0: i32) -> (i32, i32) {
    %c0_i32 = arith.constant 0 : i32
    %c0_i32_0 = arith.constant 0 : i32
    %c0_i32_1 = arith.constant 0 : i32
    return %c0_i32, %c0_i32_0 : i32, i32
  }
  func.func @transform_3(%arg0: i32) -> (i32, i32) {
    %c0_i32 = arith.constant 0 : i32
    %c0_i32_0 = arith.constant 0 : i32
    %c0_i32_1 = arith.constant 0 : i32
    return %c0_i32, %c0_i32_0 : i32, i32
  }
  func.func @transform_4(%arg0: i32) -> (i32, i32) {
    %c0_i32 = arith.constant 0 : i32
    %c0_i32_0 = arith.constant 0 : i32
    %c0_i32_1 = arith.constant 0 : i32
    return %c0_i32, %c0_i32_0 : i32, i32
  }
  func.func @transform_5(%arg0: i32) -> (i32, i32) {
    %c0_i32 = arith.constant 0 : i32
    %c0_i32_0 = arith.constant 0 : i32
    %c0_i32_1 = arith.constant 0 : i32
    return %c0_i32, %c0_i32_0 : i32, i32
  }
  func.func @transform_6(%arg0: i32) -> (i32, i32) {
    %c0_i32 = arith.constant 0 : i32
    %c0_i32_0 = arith.constant 0 : i32
    return %arg0, %c0_i32 : i32, i32
  }
}

</mosaic_0001>

<bundles_post_ra>
// kernel: tpu_custom_call.1
= control target key start
LH: loop header
LB: loop body
LE: loop exit
PB: predicated region body
PF: predicated region fallthrough
CT: control target
= control target key end

     0   :  { %11 = vsyncpa [#allocation3], 0  ;;  %s2270_s0 = inlined_call_operand.vmem [shape: f32[256,12], index: 0, kind: input, shape index: {}]   ;;  %s2271_s1 = inlined_call_operand.vmem [shape: f32[3,4,64], index: 1, kind: input, shape index: {}]   ;;  %s2272_s2 = inlined_call_operand.vmem [shape: f32[64,128], index: 2, kind: input, shape index: {}]   ;;  %s2273_s3 = inlined_call_operand.vmem [shape: f32[1,128], index: 3, kind: input, shape index: {}]   ;;  %s2274_s4 = inlined_call_operand.vmem [shape: f32[128,128], index: 4, kind: input, shape index: {}]   ;;  %s2275_s5 = inlined_call_operand.vmem [shape: f32[1,128], index: 5, kind: input, shape index: {}]   ;;  %s2276_s6 = inlined_call_operand.hbm [shape: f32[256,128], index: 6, kind: output, shape index: {}]  }
   0x1   :  { %13 = vsyncpa [#allocation3 + $0x1], 0  ;;  %s1658_s21 = smov 0   ;;  %s1660_s22 = smov 0  }
   0x2   :  { %s1662_s23 = smov 0   ;;  %s1664_s24 = smov 0  }
   0x3 LB: > { %s1679_s25 = sadd.s32 4294967295, %s1617_s24   ;;  %s1345_s26 = sadd.s32 4294967294, %s1617_s24   ;;  %s1617_s24 = sphi %s1664_s24, %s2318_s24   ;;  %s1613_s23 = sphi %s1662_s23, %s2317_s23   ;;  %s1609_s22 = sphi %s1660_s22, %s2316_s22   ;;  %s1605_s21 = sphi %s1658_s21, %s2315_s21  }
   0x4   : > { %s1683_s27 = sadd.s32 1, %s1617_s24   ;;  %s157_s28 = sadd.s32 1, %s1613_s23 }
   0x5   : > { %s154_s29 = ssub.s32 %s1617_s24, %s1683_s27  ;;  %p167_p0 = scmp.ne.s32.totalorder %s1613_s23, %s1609_s22 }
   0x6   : > { %p155_p1 = scmp.eq.s32.totalorder %s154_s29, 0  ;;  %p168_p2 = scmp.eq.s32.totalorder %s1679_s25, 1 }
   0x7   : > { %p173_p3 = scmp.ne.s32.totalorder %s1609_s22, %s1605_s21  ;;  %p174_p4 = scmp.eq.s32.totalorder %s1345_s26, 1 }
   0x8   : > { %s1694_s30 = scalar_select %p155_p1, %s1613_s23, %s157_s28  }
   0x9   : > { %p1696_p5 = por %p168_p2, %p167_p0  ;;  %p1700_p6 = por %p174_p4, %p173_p3 }
   0xa   : > { %p1348_p7 = scmp.ge.s32.totalorder %s1617_s24, 1  ;;  %p216_p8 = scmp.lt.s32.totalorder %s1617_s24, 3 }
   0xc   : > { %p217_p9 = pnand %p1348_p7, %p216_p8 }
   0xd   : > { %s1350_s9 = sshll.u32 (!%p217_p9), %s1679_s25, 4  ;;  %s1619_s14 = smov (!%p217_p9), 120  }
   0xe   : > { %220 = sbr.rel (%p217_p9) target bundleno = 693 (0x2b5), region = 44  ;;  %p247_p10 = scmp.lt.s32.totalorder (!%p217_p9), %s1350_s9, 31 }
   0xf   : > { %s1620_s15 = smov (!%p217_p9), 124   ;;  %s243_s12 = sand.u32 (!%p217_p9), 1, %s1609_s22  }
  0x10   : > { %s1442_s17 = sshll.u32 (!%p217_p9), %s1679_s25, 7  ;;  %s1268_s29 = scalar_lea.sflag (!%p217_p9), [#allocation3], %s243_s12 }
  0x11   : > { %s1279_s20 = scalar_lea.hbm (!%p217_p9), %s2276_s6, %s1442_s17 }
  0x12   : > { %s1282_s28 = sshll.u32 (!%p217_p9), %s1279_s20, 4  ;;  %s1283_s28 = int_to_ptr.hbm [resolvable:$true] %s1282_s28 }
  0x13   : > { %s2320_s9 = smov (!%p247_p10, %s1350_s9), 31 }
  0x14   : > { %s1351_s10 = sshll.u32 %s2320_s9, 3  ;;  %s1569_s9 = sshra.s32 %s1283_s28, 4  ;;  %s1570_s9 = int_to_ptr.hbm [resolvable:$true] %s1569_s9 }
  0x15   : > { %s1710_s13 = scalar_lea.vmem %s2270_s0, %s1351_s10  ;;  %s1571_s25 = scalar_lea.hbm %s1570_s9, 128 }
  0x16   : > { %v253_v0 = vld [vmem:[%s1710_s13] sm:$0xff]  ;;  %v254_v1 = vld [vmem:[%s1710_s13 + $0x8] sm:$0xff]  ;;  %v256_v2 = vld [vmem:[%s1710_s13 + $0x18] sm:$0xff]  ;;  %p1572_p11 = scmp.ne.s32.totalorder %s1570_s9, %s1571_s25  ;;  %p1576_p0 = scmp.lt.s32.totalorder %s1570_s9, %s2276_s6 }
  0x17   : > { %v1352_v3 = vmul.f32 -1.442695, %v253_v0  ;;  %v1353_v4 = vmul.f32 -1.442695, %v254_v1  ;;  %v1355_v5 = vmul.f32 -1.442695, %v256_v2 }
  0x18   : > { %v255_v6 = vld [vmem:[%s1710_s13 + $0x10] sm:$0xff]  ;;  %v257_v7 = vld [vmem:[%s1710_s13 + $0x20] sm:$0xff]  ;;  %v258_v15 = vld [vmem:[%s1710_s13 + $0x28] sm:$0xff]  ;;  %p1573_p12 = pnand %p1572_p11, %p1696_p5 }
  0x19   : > { %1491 = vpow2.f32 %v1352_v3  ;;  %v1354_v9 = vmul.f32 -1.442695, %v255_v6  ;;  %v1356_v12 = vmul.f32 -1.442695, %v257_v7  ;;  %v1357_v17 = vmul.f32 -1.442695, %v258_v15 }
  0x1a   : > { %1493 = vpow2.f32 %v1353_v4  ;;  %v259_v27 = vld [vmem:[%s1710_s13 + $0x30] sm:$0xff]  ;;  %v260_v57 = vld [vmem:[%s1710_s13 + $0x38] sm:$0xff]  ;;  %p1574_p13 = pneg %p1573_p12 }
  0x1b   : > { %1495 = vpow2.f32 %v1355_v5  ;;  %v1358_v34 = vmul.f32 -1.442695, %v259_v27  ;;  %v1359_v0 = vmul.f32 -1.442695, %v260_v57 }
  0x1c   : > { %1497 = vpow2.f32 %v1354_v9 }
  0x1f   : > { %v1492_v8 = vpop.eup %1491 }
  0x20   : > { %v1494_v10 = vpop.eup %1493  ;;  %v317_v11 = vadd.f32 1.0, %v1492_v8 }
  0x21   : > { %v1496_v13 = vpop.eup %1495  ;;  %v318_v14 = vadd.f32 1.0, %v1494_v10 }
  0x22   : > { %1499 = vrcp.f32 %v317_v11  ;;  %v1718_v16 = vadd.f32 1.0, %v1496_v13  ;;  %v1498_v18 = vpop.eup %1497  ;;  %vm338_vm0 = vweird.f32 %v317_v11  ;;  %v342_v23 = vand.u32 2147483647, %v317_v11 }
  0x23   : > { %1501 = vrcp.f32 %v318_v14  ;;  %v1721_v20 = vadd.f32 1.0, %v1498_v18  ;;  %v344_v25 = vand.u32 2147483648, %v317_v11  ;;  %vm353_vm1 = vweird.f32 %v318_v14 }
  0x24   : > { %1503 = vpow2.f32 %v1356_v12  ;;  %v359_v29 = vand.u32 2147483648, %v318_v14  ;;  %v357_v33 = vand.u32 2147483647, %v318_v14  ;;  %vm343_vm5 = vcmp.eq.f32.partialorder %v342_v23, 8.507059e+37  ;;  %v261_v12 = vld [vmem:[%s1710_s13 + $0x40] sm:$0xff] }
  0x25   : > { %1505 = vrcp.f32 %v1718_v16  ;;  %v345_v39 = vor.u32 1.1754944e-38, %v344_v25  ;;  %vm368_vm8 = vweird.f32 %v1721_v20  ;;  %v372_v52 = vand.u32 2147483647, %v1721_v20 }
  0x26   : > { %1507 = vpow2.f32 %v1357_v17  ;;  %v360_v43 = vor.u32 1.1754944e-38, %v359_v29  ;;  %vm358_vm7 = vcmp.eq.f32.partialorder %v357_v33, 8.507059e+37  ;;  %v374_v53 = vand.u32 2147483648, %v1721_v20  ;;  %v262_v17 = vld [vmem:[%s1710_s13 + $0x48] sm:$0xff] }
  0x27   : > { %1509 = vrcp.f32 %v1721_v20  ;;  %vm383_vm10 = vweird.f32 %v1718_v16  ;;  %v387_v62 = vand.u32 2147483647, %v1718_v16  ;;  %vm373_vm13 = vcmp.eq.f32.partialorder %v372_v52, 8.507059e+37 }
  0x28   : > { %v1500_v19 = vpop.eup %1499  ;;  %v375_v63 = vor.u32 1.1754944e-38, %v374_v53  ;;  %v389_v4 = vand.u32 2147483648, %v1718_v16 }
  0x29   : > { %v1502_v21 = vpop.eup %1501  ;;  %v334_v22 = vmul.f32 %v1500_v19, %v317_v11  ;;  %vm339_vm2 = vweird.f32 %v1500_v19  ;;  %vm1795_vm15 = vcmp.eq.f32.partialorder %v387_v62, 8.507059e+37 }
  0x2a   : > { %v1504_v24 = vpop.eup %1503  ;;  %v349_v26 = vmul.f32 %v1502_v21, %v318_v14  ;;  %vm354_vm3 = vweird.f32 %v1502_v21  ;;  %vm1732_vm4 = vmor %vm338_vm0, %vm339_vm2  ;;  %v1360_v14 = vmul.f32 -1.442695, %v261_v12  ;;  %v390_v15 = vor.u32 1.1754944e-38, %v389_v4  ;;  %v265_v4 = vld [vmem:[%s1710_s13 + $0x60] sm:$0xff] }
  0x2b   : > { %v335_v28 = vsub.f32 1.0, %v334_v22  ;;  %v1725_v30 = vadd.f32 1.0, %v1504_v24  ;;  %v1727_v31 = vpop.eup %1505  ;;  %vm1738_vm6 = vmor %vm353_vm1, %vm354_vm3 }
  0x2c   : > { %v350_v32 = vsub.f32 1.0, %v349_v26  ;;  %v1508_v35 = vpop.eup %1507  ;;  %v379_v37 = vmul.f32 %v1727_v31, %v1718_v16  ;;  %vm384_vm11 = vweird.f32 %v1727_v31 }
  0x2d   : > { %v336_v36 = vmul.f32 %v1500_v19, %v335_v28  ;;  %1511 = vrcp.f32 %v1725_v30  ;;  %v1510_v44 = vpop.eup %1509  ;;  %v1742_v46 = vadd.f32 1.0, %v1508_v35  ;;  %vm1783_vm14 = vmor %vm383_vm10, %vm384_vm11  ;;  %vm398_vm0 = vweird.f32 %v1725_v30 }
  0x2e   : > { %v351_v40 = vmul.f32 %v1502_v21, %v350_v32  ;;  %1513 = vpow2.f32 %v1358_v34  ;;  %v380_v48 = vsub.f32 1.0, %v379_v37  ;;  %v364_v49 = vmul.f32 %v1510_v44, %v1721_v20 }
  0x2f   : > { %v337_v41 = vadd.f32 %v1500_v19, %v336_v36  ;;  %vm369_vm9 = vweird.f32 %v1510_v44  ;;  %1515 = vrcp.f32 %v1742_v46  ;;  %v1361_v20 = vmul.f32 -1.442695, %v262_v17 }
  0x30   : > { %v352_v45 = vadd.f32 %v1502_v21, %v351_v40  ;;  %v365_v55 = vsub.f32 1.0, %v364_v49  ;;  %v381_v58 = vmul.f32 %v1727_v31, %v380_v48  ;;  %vm370_vm12 = vmor %vm368_vm8, %vm369_vm9  ;;  %1517 = vpow2.f32 %v1359_v0  ;;  %v1403_v48 = vld [vmem:[%s2271_s1 + $0x8] sm:$0xf] }
  0x31   : > { %v341_v47 = vsel %vm1732_vm4, %v1500_v19, %v337_v41  ;;  %v404_v19 = vand.u32 2147483648, %v1725_v30  ;;  %v402_v23 = vand.u32 2147483647, %v1725_v30  ;;  %v417_v27 = vand.u32 2147483647, %v1742_v46 }
  0x32   : > { %v1748_v50 = vsel %vm343_vm5, %v345_v39, %v341_v47  ;;  %v356_v51 = vsel %vm1738_vm6, %v1502_v21, %v352_v45  ;;  %v366_v59 = vmul.f32 %v1510_v44, %v365_v55  ;;  %v382_v6 = vadd.f32 %v1727_v31, %v381_v58  ;;  %v1385_v47 = vld [vmem:[%s2271_s1 + $0x4] sm:$0xf] }
  0x33   : > { %844 = vrot.lane.b32.xlu0 %v1748_v50, %s1619_s14  ;;  %v1756_v54 = vsel %vm358_vm7, %v360_v43, %v356_v51  ;;  %v1759_v56 = vpop.eup %1511  ;;  %v419_v28 = vand.u32 2147483648, %v1742_v46  ;;  %vm413_vm3 = vweird.f32 %v1742_v46  ;;  %v405_v32 = vor.u32 1.1754944e-38, %v404_v19  ;;  %v573_v43 = vld [vmem:[%s2271_s1] sm:$0xf] }
  0x34   : > { %846 = vrot.lane.b32.xlu1 %v1756_v54, %s1619_s14  ;;  %v394_v60 = vmul.f32 %v1759_v56, %v1725_v30  ;;  %v1514_v61 = vpop.eup %1513  ;;  %v367_v1 = vadd.f32 %v1510_v44, %v366_v59  ;;  %vm399_vm1 = vweird.f32 %v1759_v56  ;;  %v386_v18 = vsel %vm1783_vm14, %v1727_v31, %v382_v6 }
  0x35   : > { %v1772_v3 = vadd.f32 1.0, %v1514_v61  ;;  %v1775_v5 = vpop.eup %1515  ;;  %vm1815_vm2 = vmor %vm398_vm0, %vm399_vm1  ;;  %v1825_v31 = vsel %vm1795_vm15, %v390_v15, %v386_v18  ;;  %vm1835_vm5 = vcmp.eq.f32.partialorder %v402_v23, 8.507059e+37  ;;  %vm1846_vm7 = vcmp.eq.f32.partialorder %v417_v27, 8.507059e+37 }
  0x36   : > { %v395_v2 = vsub.f32 1.0, %v394_v60  ;;  %v371_v7 = vsel %vm370_vm12, %v1510_v44, %v367_v1  ;;  %v409_v11 = vmul.f32 %v1775_v5, %v1742_v46  ;;  %v1518_v21 = vpop.eup %1517  ;;  %vm414_vm4 = vweird.f32 %v1775_v5  ;;  %v263_v44 = vld [vmem:[%s1710_s13 + $0x50] sm:$0xff] }
  0x37   : > { %1519 = vrcp.f32 %v1772_v3  ;;  %v1787_v9 = vsel %vm373_vm13, %v375_v63, %v371_v7  ;;  %v1821_v29 = vadd.f32 1.0, %v1518_v21  ;;  %vm1842_vm6 = vmor %vm413_vm3, %vm414_vm4  ;;  %v420_v40 = vor.u32 1.1754944e-38, %v419_v28  ;;  %v264_v63 = vld [vmem:[%s1710_s13 + $0x58] sm:$0xff] }
  0x38   : > { %v396_v10 = vmul.f32 %v1759_v56, %v395_v2  ;;  %848 = vrot.lane.b32.xlu2 %v1787_v9, %s1619_s14  ;;  %v410_v16 = vsub.f32 1.0, %v409_v11  ;;  %1521 = vpow2.f32 %v1360_v14  ;;  %vm623_vm8 = vcmask 1043456  }
  0x39   : > { %1523 = vpow2.f32 %v1361_v20  ;;  %vm574_vm9 = vcmask 31744   ;;  %1443 = vmatpush.msk.msra.mxu1 %vm623_vm8, %v573_v43  ;;  %1444 = vmatpush.msk.msra.mxu2 %vm623_vm8, %v573_v43  ;;  %v1362_v49 = vmul.f32 -1.442695, %v263_v44  ;;  %vm428_vm10 = vweird.f32 %v1772_v3 }
  0x3a   : > { %v397_v22 = vadd.f32 %v1759_v56, %v396_v10  ;;  %v411_v24 = vmul.f32 %v1775_v5, %v410_v16  ;;  %1525 = vrcp.f32 %v1821_v29  ;;  %v432_v53 = vand.u32 2147483647, %v1772_v3  ;;  %1368 = vmatpush.msk.msra.mxu0 %vm623_vm8, %v573_v43  ;;  %1445 = vmatpush.msk.msra.mxu3 %vm623_vm8, %v573_v43 }
  0x3b   : > { %694 = vrot.lane.b32.xlu0 %v1748_v50, %s1620_s15  ;;  %1404 = vmatpush.msk.msrb.mxu2 %vm623_vm8, %v1403_v48  ;;  %v434_v55 = vand.u32 2147483648, %v1772_v3  ;;  %vm443_vm14 = vweird.f32 %v1821_v29  ;;  %v447_v6 = vand.u32 2147483647, %v1821_v29  ;;  %v449_v7 = vand.u32 2147483648, %v1821_v29 }
  0x3c   : > { %696 = vrot.lane.b32.xlu1 %v1756_v54, %s1620_s15  ;;  %v401_v33 = vsel %vm1815_vm2, %v1759_v56, %v397_v22  ;;  %v412_v35 = vadd.f32 %v1775_v5, %v411_v24  ;;  %1386 = vmatpush.msk.msrb.mxu1 %vm623_vm8, %v1385_v47  ;;  %vm1905_vm13 = vcmp.eq.f32.partialorder %v432_v53, 8.507059e+37  ;;  %v1364_v10 = vmul.f32 -1.442695, %v265_v4 }
  0x3d   : > { %v1813_v25 = vpop.eup %1519  ;;  %v406_v46 = vsel %vm1835_vm5, %v405_v32, %v401_v33  ;;  %1369 = vmatmul.msk.f32.vlgmr.msra.gmra.mxu0 %vm574_vm9, %v1748_v50  ;;  %v435_v62 = vor.u32 1.1754944e-38, %v434_v55  ;;  %v266_v32 = vld [vmem:[%s1710_s13 + $0x68] sm:$0xff] }
  0x3e   : > { %v424_v30 = vmul.f32 %v1813_v25, %v1772_v3  ;;  %v1522_v37 = vpop.eup %1521  ;;  %v416_v51 = vsel %vm1842_vm6, %v1775_v5, %v412_v35  ;;  %vm429_vm11 = vweird.f32 %v1813_v25  ;;  %1373 = vmatmul.msk.f32.vlgmr.msra.gmra.mxu1 %vm574_vm9, %v406_v46  ;;  %v1363_v3 = vmul.f32 -1.442695, %v264_v63 }
  0x3f   : > { %v1855_v42 = vadd.f32 1.0, %v1522_v37  ;;  %v1524_v45 = vpop.eup %1523  ;;  %v421_v59 = vsel %vm1846_vm7, %v420_v40, %v416_v51  ;;  %vm1899_vm12 = vmor %vm428_vm10, %vm429_vm11  ;;  %vm1966_vm6 = vcmp.eq.f32.partialorder %v447_v6, 8.507059e+37  ;;  %v1365_v43 = vmul.f32 -1.442695, %v266_v32 }
  0x40   : > { %v425_v36 = vsub.f32 1.0, %v424_v30  ;;  %698 = vrot.lane.b32.xlu2 %v1787_v9, %s1620_s15  ;;  %v1879_v52 = vpop.eup %1525  ;;  %v1883_v56 = vadd.f32 1.0, %v1524_v45 }
  0x41   : > { %1527 = vrcp.f32 %v1855_v42  ;;  %v439_v58 = vmul.f32 %v1879_v52, %v1821_v29  ;;  %vm444_vm15 = vweird.f32 %v1879_v52  ;;  %vm458_vm0 = vweird.f32 %v1855_v42 }
  0x42   : > { %v426_v41 = vmul.f32 %v1813_v25, %v425_v36  ;;  %1529 = vpow2.f32 %v1362_v49  ;;  %v462_v15 = vand.u32 2147483647, %v1855_v42  ;;  %vm1942_vm2 = vmor %vm443_vm14, %vm444_vm15  ;;  %v464_v20 = vand.u32 2147483648, %v1855_v42 }
  0x43   : > { %850 = vrot.lane.b32.xlu0 %v1825_v31, %s1619_s14  ;;  %1531 = vrcp.f32 %v1883_v56  ;;  %v440_v61 = vsub.f32 1.0, %v439_v58  ;;  %v477_v21 = vand.u32 2147483647, %v1883_v56  ;;  %v479_v22 = vand.u32 2147483648, %v1883_v56 }
  0x44   : > { %700 = vrot.lane.b32.xlu1 %v1825_v31, %s1620_s15  ;;  %v427_v57 = vadd.f32 %v1813_v25, %v426_v41  ;;  %1533 = vpow2.f32 %v1363_v3  ;;  %vm473_vm3 = vweird.f32 %v1883_v56  ;;  %vm1970_vm7 = vcmp.eq.f32.partialorder %v462_v15, 8.507059e+37 }
  0x45   : > { %v441_v2 = vmul.f32 %v1879_v52, %v440_v61  ;;  %1535 = vpow2.f32 %v1364_v10  ;;  %1370 = vmatmul.msk.f32.gmra.mxu0 %vm574_vm9, %v1756_v54  ;;  %v450_v54 = vor.u32 1.1754944e-38, %v449_v7  ;;  %v465_v34 = vor.u32 1.1754944e-38, %v464_v20 }
  0x46   : > { %v431_v1 = vsel %vm1899_vm12, %v1813_v25, %v427_v57  ;;  %1374 = vmatmul.msk.f32.gmra.mxu1 %vm574_vm9, %v421_v59  ;;  %vm1982_vm10 = vcmp.eq.f32.partialorder %v477_v21, 8.507059e+37  ;;  %v480_v37 = vor.u32 1.1754944e-38, %v479_v22 }
  0x47   : > { %v1911_v0 = vpop.eup %1527  ;;  %v436_v13 = vsel %vm1905_vm13, %v435_v62, %v431_v1  ;;  %v442_v16 = vadd.f32 %v1879_v52, %v441_v2 }
  0x48   : > { %852 = vrot.lane.b32.xlu2 %v406_v46, %s1619_s14  ;;  %v1530_v5 = vpop.eup %1529  ;;  %v454_v8 = vmul.f32 %v1911_v0, %v1855_v42  ;;  %vm459_vm1 = vweird.f32 %v1911_v0 }
  0x49   : > { %v1926_v11 = vadd.f32 1.0, %v1530_v5  ;;  %v1532_v12 = vpop.eup %1531  ;;  %vm1957_vm5 = vmor %vm458_vm0, %vm459_vm1  ;;  %v446_v27 = vsel %vm1942_vm2, %v1879_v52, %v442_v16  ;;  %v267_v16 = vld [vmem:[%s1710_s13 + $0x70] sm:$0xff] }
  0x4a   : > { %v455_v14 = vsub.f32 1.0, %v454_v8  ;;  %v469_v17 = vmul.f32 %v1532_v12, %v1883_v56  ;;  %vm474_vm4 = vweird.f32 %v1532_v12  ;;  %v1534_v26 = vpop.eup %1533  ;;  %v451_v44 = vsel %vm1966_vm6, %v450_v54, %v446_v27  ;;  %v268_v27 = vld [vmem:[%s1710_s13 + $0x78] sm:$0xff]  ;;  %s1349_s13 = sshll.u32 %s243_s12, 7 }
  0x4b   : > { %702 = vrot.lane.b32.xlu0 %v406_v46, %s1620_s15  ;;  %1537 = vrcp.f32 %v1926_v11  ;;  %v1536_v33 = vpop.eup %1535  ;;  %vm1978_vm8 = vmor %vm473_vm3, %vm474_vm4  ;;  %v328_v38 = vadd.f32 1.0, %v1534_v26  ;;  %vm488_vm11 = vweird.f32 %v1926_v11  ;;  %v494_v47 = vand.u32 2147483648, %v1926_v11  ;;  %s2218_s16 = scalar_lea.vmem [#allocation2], %s1349_s13  ;;  %s1575_s13 = scalar_lea.hbm %s2276_s6, 256 }
  0x4c   : > { %854 = vrot.lane.b32.xlu1 %v421_v59, %s1619_s14  ;;  %v456_v19 = vmul.f32 %v1911_v0, %v455_v14  ;;  %v470_v23 = vsub.f32 1.0, %v469_v17  ;;  %v1990_v42 = vadd.f32 1.0, %v1536_v33  ;;  %v492_v52 = vand.u32 2147483647, %v1926_v11  ;;  %s1280_s26 = sshll.u32 %s2218_s16, 4  ;;  %p1577_p1 = scmp.lt.s32.totalorder %s1575_s13, %s1571_s25  ;;  %s1281_s26 = int_to_ptr.vmem [resolvable:$true] %s1280_s26 }
  0x4d   : > { %1539 = vrcp.f32 %v328_v38  ;;  %1371 = vmatmul.msk.f32.gmra.mxu0 %vm574_vm9, %v1787_v9  ;;  %v495_v57 = vor.u32 1.1754944e-38, %v494_v47  ;;  %vm503_vm15 = vweird.f32 %v328_v38  ;;  %v507_v4 = vand.u32 2147483647, %v328_v38 }
  0x4e   : > { %v457_v24 = vadd.f32 %v1911_v0, %v456_v19  ;;  %v471_v30 = vmul.f32 %v1532_v12, %v470_v23  ;;  %1375 = vmatmul.msk.f32.gmra.mxu1 %vm574_vm9, %v436_v13  ;;  %1541 = vrcp.f32 %v1990_v42  ;;  %vm493_vm14 = vcmp.eq.f32.partialorder %v492_v52, 8.507059e+37  ;;  %p1578_p2 = por %p1577_p1, %p1576_p0 }
  0x4f   : > { %1543 = vpow2.f32 %v1365_v43  ;;  %vm508_vm2 = vcmp.eq.f32.partialorder %v507_v4, 8.507059e+37  ;;  %vm518_vm3 = vweird.f32 %v1990_v42  ;;  %v524_v8 = vand.u32 2147483648, %v1990_v42 }
  0x50   : > { %704 = vrot.lane.b32.xlu2 %v421_v59, %s1620_s15  ;;  %v461_v40 = vsel %vm1957_vm5, %v1911_v0, %v457_v24  ;;  %v472_v41 = vadd.f32 %v1532_v12, %v471_v30  ;;  %v509_v0 = vand.u32 2147483648, %v328_v38  ;;  %v1366_v19 = vmul.f32 -1.442695, %v267_v16  ;;  %p1579_p3 = pnand %p1578_p2, %p1574_p13 }
  0x51   : > { %v1538_v39 = vpop.eup %1537  ;;  %v466_v48 = vsel %vm1970_vm7, %v465_v34, %v461_v40  ;;  %v525_v17 = vor.u32 1.1754944e-38, %v524_v8  ;;  %v1367_v30 = vmul.f32 -1.442695, %v268_v27 }
  0x52   : > { %v484_v45 = vmul.f32 %v1538_v39, %v1926_v11  ;;  %v476_v46 = vsel %vm1978_vm8, %v1532_v12, %v472_v41  ;;  %vm489_vm12 = vweird.f32 %v1538_v39  ;;  %v510_v6 = vor.u32 1.1754944e-38, %v509_v0 }
  0x53   : > { %856 = vrot.lane.b32.xlu0 %v436_v13, %s1619_s14  ;;  %v481_v49 = vsel %vm1982_vm10, %v480_v37, %v476_v46  ;;  %vm2013_vm13 = vmor %vm488_vm11, %vm489_vm12  ;;  %v1540_v55 = vpop.eup %1539 }
  0x54   : > { %706 = vrot.lane.b32.xlu1 %v436_v13, %s1620_s15  ;;  %v485_v51 = vsub.f32 1.0, %v484_v45  ;;  %1378 = vmatmul.msk.f32.vlgmr.msra.gmra.mxu2 %vm574_vm9, %v481_v49  ;;  %v1542_v58 = vpop.eup %1541  ;;  %v499_v59 = vmul.f32 %v1540_v55, %v328_v38  ;;  %vm504_vm0 = vweird.f32 %v1540_v55  ;;  %v522_v13 = vand.u32 2147483647, %v1990_v42 }
  0x55   : > { %v514_v61 = vmul.f32 %v1542_v58, %v1990_v42  ;;  %v1544_v50 = vpop.eup %1543  ;;  %1372 = vmatmul.msk.f32.gmra.mxu0 %vm574_vm9, %v1825_v31  ;;  %vm505_vm1 = vmor %vm503_vm15, %vm504_vm0  ;;  %vm519_vm4 = vweird.f32 %v1542_v58 }
  0x56   : > { %v486_v53 = vmul.f32 %v1538_v39, %v485_v51  ;;  %1376 = vmatmul.msk.f32.gmra.mxu1 %vm574_vm9, %v451_v44  ;;  %v500_v62 = vsub.f32 1.0, %v499_v59  ;;  %v330_v2 = vadd.f32 1.0, %v1544_v50  ;;  %vm2032_vm5 = vmor %vm518_vm3, %vm519_vm4  ;;  %vm523_vm8 = vcmp.eq.f32.partialorder %v522_v13, 8.507059e+37  ;;  %v998_v13 = vld [vmem:[%s2272_s2 + $0x30] sm:$0xff] }
  0x57   : > { %v515_v1 = vsub.f32 1.0, %v514_v61  ;;  %vm1004_vm4 = vcmask 523264  }
  0x58   : > { %858 = vrot.lane.b32.xlu2 %v451_v44, %s1619_s14  ;;  %v487_v56 = vadd.f32 %v1538_v39, %v486_v53  ;;  %v501_v3 = vmul.f32 %v1540_v55, %v500_v62  ;;  %1545 = vrcp.f32 %v330_v2  ;;  %v539_v18 = vand.u32 2147483648, %v330_v2 }
  0x59   : > { %v516_v31 = vmul.f32 %v1542_v58, %v515_v1  ;;  %vm533_vm6 = vweird.f32 %v330_v2  ;;  %v537_v21 = vand.u32 2147483647, %v330_v2  ;;  %1547 = vpow2.f32 %v1366_v19  ;;  %v995_v19 = vld [vmem:[%s2272_s2 + $0x18] sm:$0xff] }
  0x5a   : > { %v491_v60 = vsel %vm2013_vm13, %v1538_v39, %v487_v56  ;;  %v502_v5 = vadd.f32 %v1540_v55, %v501_v3  ;;  %v540_v54 = vor.u32 1.1754944e-38, %v539_v18  ;;  %1549 = vpow2.f32 %v1367_v30  ;;  %v996_v18 = vld [vmem:[%s2272_s2 + $0x20] sm:$0xff] }
  0x5b   : > { %708 = vrot.lane.b32.xlu0 %v451_v44, %s1620_s15  ;;  %v496_v63 = vsel %vm493_vm14, %v495_v57, %v491_v60  ;;  %v517_v12 = vadd.f32 %v1542_v58, %v516_v31  ;;  %vm538_vm11 = vcmp.eq.f32.partialorder %v537_v21, 8.507059e+37 }
  0x5c   : > { %860 = vrot.lane.b32.xlu1 %v466_v48, %s1619_s14  ;;  %1379 = vmatmul.msk.f32.gmra.mxu2 %vm574_vm9, %v496_v63  ;;  %v506_v7 = vsel %vm505_vm1, %v1540_v55, %v502_v5 }
  0x5d   : > { %v511_v11 = vsel %vm508_vm2, %v510_v6, %v506_v7  ;;  %v521_v22 = vsel %vm2032_vm5, %v1542_v58, %v517_v12  ;;  %v999_v12 = vld [vmem:[%s2272_s2 + $0x38] sm:$0xff] }
  0x5e   : > { %1377 = vmatmul.msk.f32.gmra.mxu1 %vm574_vm9, %v466_v48  ;;  %v1546_v10 = vpop.eup %1545  ;;  %v526_v24 = vsel %vm523_vm8, %v525_v17, %v521_v22  ;;  %1061 = vmatpush.msrb.mxu3 %v999_v12  ;;  %v997_v17 = vld [vmem:[%s2272_s2 + $0x28] sm:$0xff] }
  0x5f   : > { %v529_v15 = vmul.f32 %v1546_v10, %v330_v2  ;;  %vm534_vm7 = vweird.f32 %v1546_v10  ;;  %v1548_v28 = vpop.eup %1547 }
  0x60   : > { %710 = vrot.lane.b32.xlu2 %v466_v48, %s1620_s15  ;;  %vm535_vm10 = vmor %vm533_vm6, %vm534_vm7  ;;  %v331_v32 = vadd.f32 1.0, %v1548_v28  ;;  %v1550_v33 = vpop.eup %1549  ;;  %1062 = vmatpush.msrb.mxu3 %v998_v13 }
  0x61   : > { %v530_v20 = vsub.f32 1.0, %v529_v15  ;;  %v332_v35 = vadd.f32 1.0, %v1550_v33 }
  0x62   : > { %1551 = vrcp.f32 %v331_v32  ;;  %v554_v39 = vand.u32 2147483648, %v331_v32  ;;  %vm548_vm12 = vweird.f32 %v331_v32  ;;  %v552_v41 = vand.u32 2147483647, %v331_v32  ;;  %1063 = vmatpush.msrb.mxu3 %v997_v17 }
  0x63   : > { %862 = vrot.lane.b32.xlu0 %v481_v49, %s1619_s14  ;;  %v531_v23 = vmul.f32 %v1546_v10, %v530_v20  ;;  %1553 = vrcp.f32 %v332_v35  ;;  %vm563_vm0 = vweird.f32 %v332_v35  ;;  %v567_v52 = vand.u32 2147483647, %v332_v35 }
  0x64   : > { %712 = vrot.lane.b32.xlu1 %v481_v49, %s1620_s15  ;;  %1380 = vmatmul.msk.f32.gmra.mxu2 %vm574_vm9, %v511_v11  ;;  %v555_v43 = vor.u32 1.1754944e-38, %v554_v39  ;;  %vm553_vm15 = vcmp.eq.f32.partialorder %v552_v41, 8.507059e+37  ;;  %v569_v49 = vand.u32 2147483648, %v332_v35 }
  0x65   : > { %v532_v25 = vadd.f32 %v1546_v10, %v531_v23  ;;  %vm568_vm3 = vcmp.eq.f32.partialorder %v567_v52, 8.507059e+37  ;;  %1064 = vmatpush.msrb.mxu3 %v996_v18 }
  0x66   : > { %v570_v53 = vor.u32 1.1754944e-38, %v569_v49 }
  0x67   : > { %v536_v26 = vsel %vm535_vm10, %v1546_v10, %v532_v25  ;;  %1065 = vmatpush.msrb.mxu3 %v995_v19 }
  0x68   : > { %864 = vrot.lane.b32.xlu2 %v496_v63, %s1619_s14  ;;  %v541_v29 = vsel %vm538_vm11, %v540_v54, %v536_v26  ;;  %v1552_v34 = vpop.eup %1551  ;;  %v994_v54 = vld [vmem:[%s2272_s2 + $0x10] sm:$0xff] }
  0x69   : > { %1382 = vmatmul.msk.f32.vlgmr.msra.gmra.mxu3 %vm574_vm9, %v541_v29  ;;  %v544_v36 = vmul.f32 %v1552_v34, %v331_v32  ;;  %vm549_vm13 = vweird.f32 %v1552_v34  ;;  %v1554_v42 = vpop.eup %1553 }
  0x6a   : > { %vm550_vm14 = vmor %vm548_vm12, %vm549_vm13  ;;  %v559_v45 = vmul.f32 %v1554_v42, %v332_v35  ;;  %vm564_vm1 = vweird.f32 %v1554_v42  ;;  %1066 = vmatpush.msrb.mxu3 %v994_v54  ;;  %v1180_v54 = vld [vmem:[%s2274_s4 + $0x70] sm:$0xff] }
  0x6b   : > { %714 = vrot.lane.b32.xlu0 %v496_v63, %s1620_s15  ;;  %v545_v37 = vsub.f32 1.0, %v544_v36  ;;  %vm565_vm2 = vmor %vm563_vm0, %vm564_vm1 }
  0x6c   : > { %866 = vrot.lane.b32.xlu1 %v511_v11, %s1619_s14  ;;  %1381 = vmatmul.msk.f32.gmra.mxu2 %vm574_vm9, %v526_v24  ;;  %v560_v47 = vsub.f32 1.0, %v559_v45 }
  0x6d   : > { %v546_v38 = vmul.f32 %v1552_v34, %v545_v37 }
  0x6e   : > { %v561_v48 = vmul.f32 %v1554_v42, %v560_v47 }
  0x6f   : > { %v547_v40 = vadd.f32 %v1552_v34, %v546_v38 }
  0x70   : > { %716 = vrot.lane.b32.xlu2 %v511_v11, %s1620_s15  ;;  %v562_v51 = vadd.f32 %v1554_v42, %v561_v48 }
  0x71   : > { %v551_v44 = vsel %vm550_vm14, %v1552_v34, %v547_v40 }
  0x72   : > { %v556_v46 = vsel %vm553_vm15, %v555_v43, %v551_v44  ;;  %v566_v9 = vsel %vm565_vm2, %v1554_v42, %v562_v51 }
  0x73   : > { %868 = vrot.lane.b32.xlu0 %v526_v24, %s1619_s14  ;;  %1383 = vmatmul.msk.f32.gmra.mxu3 %vm574_vm9, %v556_v46  ;;  %v571_v55 = vsel %vm568_vm3, %v570_v53, %v566_v9 }
  0x74   : > { %718 = vrot.lane.b32.xlu1 %v526_v24, %s1620_s15  ;;  %v993_v24 = vld [vmem:[%s2272_s2 + $0x8] sm:$0xff] }
  0x75   : > { %1067 = vmatpush.msrb.mxu3 %v993_v24 }
  0x78   : > { %870 = vrot.lane.b32.xlu2 %v541_v29, %s1619_s14 }
  0x7b   : > { %720 = vrot.lane.b32.xlu0 %v541_v29, %s1620_s15  ;;  %1384 = vmatmul.msk.f32.gmra.mxu3 %vm574_vm9, %v571_v55  ;;  %v992_v29 = vld [vmem:[%s2272_s2] sm:$0xff] }
  0x7c   : > { %872 = vrot.lane.b32.xlu1 %v556_v46, %s1619_s14  ;;  %1068 = vmatpush.msrb.mxu3 %v992_v29 }
  0x80   : > { %722 = vrot.lane.b32.xlu2 %v556_v46, %s1620_s15 }
  0x83   : > { %874 = vrot.lane.b32.xlu0 %v571_v55, %s1619_s14 }
  0x84   : > { %724 = vrot.lane.b32.xlu1 %v571_v55, %s1620_s15 }
  0x92   : > { %v849_v59 = vpop.permute.xlu2 %848 }
  0x9a   : > { %v699_v61 = vpop.permute.xlu2 %698 }
  0xa2   : > { %v853_v63 = vpop.permute.xlu2 %852 }
  0xa5   : > { %v845_v56 = vpop.permute.xlu0 %844 }
  0xa6   : > { %1405 = vmatmul.msk.f32.vlgmr.msrb.gmra.mxu2 %vm574_vm9, %v845_v56  ;;  %v847_v57 = vpop.permute.xlu1 %846 }
  0xaa   : > { %v705_v2 = vpop.permute.xlu2 %704 }
  0xad   : > { %v695_v58 = vpop.permute.xlu0 %694 }
  0xae   : > { %1387 = vmatmul.msk.f32.vlgmr.msrb.gmra.mxu1 %vm574_vm9, %v695_v58  ;;  %1406 = vmatmul.msk.f32.gmra.mxu2 %vm574_vm9, %v847_v57  ;;  %v697_v60 = vpop.permute.xlu1 %696 }
  0xb2   : > { %v859_v5 = vpop.permute.xlu2 %858 }
  0xb5   : > { %v851_v50 = vpop.permute.xlu0 %850 }
  0xb6   : > { %1388 = vmatmul.msk.f32.gmra.mxu1 %vm574_vm9, %v697_v60  ;;  %1407 = vmatmul.msk.f32.gmra.mxu2 %vm574_vm9, %v849_v59  ;;  %v701_v62 = vpop.permute.xlu1 %700 }
  0xba   : > { %v711_v7 = vpop.permute.xlu2 %710  ;;  %v644_v40 = vpop.f32.mrf.mxu0 }
  0xbb   : > { %v2083_v14 = vpop.f32.mrf.mxu1 }
  0xbd   : > { %v703_v0 = vpop.permute.xlu0 %702 }
  0xbe   : > { %1389 = vmatmul.msk.f32.gmra.mxu1 %vm574_vm9, %v699_v61  ;;  %1408 = vmatmul.msk.f32.gmra.mxu2 %vm574_vm9, %v851_v50  ;;  %v855_v1 = vpop.permute.xlu1 %854 }
  0xc2   : > { %v865_v11 = vpop.permute.xlu2 %864  ;;  %v647_v44 = vpop.f32.mrf.mxu0 }
  0xc3   : > { %v659_v23 = vpop.f32.mrf.mxu1 }
  0xc5   : > { %v857_v3 = vpop.permute.xlu0 %856 }
  0xc6   : > { %1390 = vmatmul.msk.f32.gmra.mxu1 %vm574_vm9, %v701_v62  ;;  %1409 = vmatmul.msk.f32.gmra.mxu2 %vm574_vm9, %v853_v63  ;;  %v707_v4 = vpop.permute.xlu1 %706 }
  0xca   : > { %v717_v21 = vpop.permute.xlu2 %716  ;;  %v650_v51 = vpop.f32.mrf.mxu0 }
  0xcb   : > { %v662_v28 = vpop.f32.mrf.mxu1 }
  0xcd   : > { %v709_v6 = vpop.permute.xlu0 %708 }
  0xce   : > { %1391 = vmatmul.msk.f32.gmra.mxu1 %vm574_vm9, %v703_v0  ;;  %1410 = vmatmul.msk.f32.gmra.mxu2 %vm574_vm9, %v855_v1  ;;  %v861_v31 = vpop.permute.xlu1 %860 }
  0xd2   : > { %v871_v27 = vpop.permute.xlu2 %870  ;;  %v653_v56 = vpop.f32.mrf.mxu0 }
  0xd3   : > { %v665_v34 = vpop.f32.mrf.mxu1 }
  0xd5   : > { %v863_v8 = vpop.permute.xlu0 %862 }
  0xd6   : > { %1392 = vmatmul.msk.f32.gmra.mxu1 %vm574_vm9, %v705_v2  ;;  %1411 = vmatmul.msk.f32.gmra.mxu2 %vm574_vm9, %v857_v3  ;;  %v713_v10 = vpop.permute.xlu1 %712 }
  0xd7   : > { %v2096_v20 = vpop.f32.mrf.mxu2 }
  0xda   : > { %v723_v35 = vpop.permute.xlu2 %722 }
  0xdb   : > { %v668_v38 = vpop.f32.mrf.mxu1 }
  0xdd   : > { %v715_v15 = vpop.permute.xlu0 %714 }
  0xde   : > { %1393 = vmatmul.msk.f32.gmra.mxu1 %vm574_vm9, %v707_v4  ;;  %1412 = vmatmul.msk.f32.gmra.mxu2 %vm574_vm9, %v859_v5  ;;  %v867_v16 = vpop.permute.xlu1 %866 }
  0xdf   : > { %v2106_v26 = vpop.f32.mrf.mxu2 }
  0xe5   : > { %v869_v22 = vpop.permute.xlu0 %868 }
  0xe6   : > { %1394 = vmatmul.msk.f32.gmra.mxu1 %vm574_vm9, %v709_v6  ;;  %1413 = vmatmul.msk.f32.gmra.mxu2 %vm574_vm9, %v861_v31  ;;  %v719_v25 = vpop.permute.xlu1 %718 }
  0xe7   : > { %v2113_v33 = vpop.f32.mrf.mxu2 }
  0xed   : > { %v721_v30 = vpop.permute.xlu0 %720 }
  0xee   : > { %1395 = vmatmul.msk.f32.gmra.mxu1 %vm574_vm9, %v711_v7  ;;  %1414 = vmatmul.msk.f32.gmra.mxu2 %vm574_vm9, %v863_v8  ;;  %v873_v32 = vpop.permute.xlu1 %872 }
  0xef   : > { %v2119_v37 = vpop.f32.mrf.mxu2 }
  0xf5   : > { %v875_v36 = vpop.permute.xlu0 %874 }
  0xf6   : > { %1396 = vmatmul.msk.f32.gmra.mxu1 %vm574_vm9, %v713_v10  ;;  %1415 = vmatmul.msk.f32.gmra.mxu2 %vm574_vm9, %v865_v11  ;;  %v725_v39 = vpop.permute.xlu1 %724 }
  0xfe   : > { %1397 = vmatmul.msk.f32.gmra.mxu1 %vm574_vm9, %v715_v15  ;;  %1416 = vmatmul.msk.f32.gmra.mxu2 %vm574_vm9, %v867_v16 }
 0x106   : > { %1398 = vmatmul.msk.f32.gmra.mxu1 %vm574_vm9, %v717_v21  ;;  %1417 = vmatmul.msk.f32.gmra.mxu2 %vm574_vm9, %v869_v22  ;;  %v1181_v21 = vld [vmem:[%s2274_s4 + $0x78] sm:$0xff] }
 0x107   : > { %1186 = vmatpush.msrb.mxu0 %v1181_v21 }
 0x109   : > { %1187 = vmatpush.msrb.mxu0 %v1180_v54 }
 0x10e   : > { %1399 = vmatmul.msk.f32.gmra.mxu1 %vm574_vm9, %v719_v25  ;;  %1418 = vmatmul.msk.f32.gmra.mxu2 %vm574_vm9, %v871_v27  ;;  %v1178_v27 = vld [vmem:[%s2274_s4 + $0x60] sm:$0xff] }
 0x116   : > { %1400 = vmatmul.msk.f32.gmra.mxu1 %vm574_vm9, %v721_v30  ;;  %1419 = vmatmul.msk.f32.gmra.mxu2 %vm574_vm9, %v873_v32  ;;  %v1176_v30 = vld [vmem:[%s2274_s4 + $0x50] sm:$0xff] }
 0x11e   : > { %1401 = vmatmul.msk.f32.gmra.mxu1 %vm574_vm9, %v723_v35  ;;  %1420 = vmatmul.msk.f32.gmra.mxu2 %vm574_vm9, %v875_v36  ;;  %v1174_v36 = vld [vmem:[%s2274_s4 + $0x40] sm:$0xff] }
 0x126   : > { %1402 = vmatmul.msk.f32.gmra.mxu1 %vm574_vm9, %v725_v39 }
 0x129   : > { %v928_v41 = vpop.f32.mrf.mxu2 }
 0x12b   : > { %v778_v42 = vpop.f32.mrf.mxu1 }
 0x12c   : > { %v826_v43 = vmul.f32 %v778_v42, %v644_v40 }
 0x12e   : > { %v976_v45 = vmul.f32 %v928_v41, %v826_v43  ;;  %v1171_v41 = vld [vmem:[%s2274_s4 + $0x28] sm:$0xff]  ;;  %v683_v43 = vpop.f32.mrf.mxu3 }
 0x130   : > { %1421 = vmatmul.msk.f32.vlgmr.msrb.gmra.mxu3 %vm1004_vm4, %v976_v45 }
 0x131   : > { %v931_v46 = vpop.f32.mrf.mxu2 }
 0x133   : > { %v781_v47 = vpop.f32.mrf.mxu1 }
 0x134   : > { %v827_v48 = vmul.f32 %v781_v47, %v647_v44  ;;  %v1170_v44 = vld [vmem:[%s2274_s4 + $0x20] sm:$0xff] }
 0x136   : > { %v977_v49 = vmul.f32 %v931_v46, %v827_v48  ;;  %v1169_v46 = vld [vmem:[%s2274_s4 + $0x18] sm:$0xff] }
 0x138   : > { %1422 = vmatmul.msk.f32.gmra.mxu3 %vm1004_vm4, %v977_v49 }
 0x139   : > { %v934_v52 = vpop.f32.mrf.mxu2 }
 0x13b   : > { %v784_v53 = vpop.f32.mrf.mxu1 }
 0x13c   : > { %v828_v9 = vmul.f32 %v784_v53, %v650_v51  ;;  %v1167_v51 = vld [vmem:[%s2274_s4 + $0x8] sm:$0xff]  ;;  %v1166_v53 = vld [vmem:[%s2274_s4] sm:$0xff] }
 0x13e   : > { %v978_v55 = vmul.f32 %v934_v52, %v828_v9  ;;  %v686_v9 = vpop.f32.mrf.mxu3 }
 0x140   : > { %1423 = vmatmul.msk.f32.gmra.mxu3 %vm1004_vm4, %v978_v55 }
 0x141   : > { %v937_v57 = vpop.f32.mrf.mxu2 }
 0x143   : > { %v787_v58 = vpop.f32.mrf.mxu1 }
 0x144   : > { %v829_v59 = vmul.f32 %v787_v58, %v653_v56 }
 0x146   : > { %v979_v60 = vmul.f32 %v937_v57, %v829_v59  ;;  %v689_v59 = vpop.f32.mrf.mxu3 }
 0x148   : > { %1424 = vmatmul.msk.f32.gmra.mxu3 %vm1004_vm4, %v979_v60 }
 0x149   : > { %v940_v61 = vpop.f32.mrf.mxu2 }
 0x14b   : > { %v790_v50 = vpop.f32.mrf.mxu1 }
 0x14c   : > { %v830_v62 = vmul.f32 %v790_v50, %v2083_v14 }
 0x14e   : > { %v980_v63 = vmul.f32 %v940_v61, %v830_v62 }
 0x150   : > { %1425 = vmatmul.msk.f32.gmra.mxu3 %vm1004_vm4, %v980_v63  ;;  %v2194_v63 = vld [vmem:[%s2273_s3] ss:$0 sm:$0xff] }
 0x151   : > { %v943_v0 = vpop.f32.mrf.mxu2 }
 0x153   : > { %v793_v1 = vpop.f32.mrf.mxu1 }
 0x154   : > { %v831_v2 = vmul.f32 %v793_v1, %v659_v23 }
 0x156   : > { %v981_v3 = vmul.f32 %v943_v0, %v831_v2 }
 0x158   : > { %1426 = vmatmul.msk.f32.gmra.mxu3 %vm1004_vm4, %v981_v3 }
 0x159   : > { %v946_v4 = vpop.f32.mrf.mxu2 }
 0x15b   : > { %v796_v5 = vpop.f32.mrf.mxu1 }
 0x15c   : > { %v832_v6 = vmul.f32 %v796_v5, %v662_v28  ;;  %v1177_v28 = vld [vmem:[%s2274_s4 + $0x58] sm:$0xff] }
 0x15e   : > { %v982_v31 = vmul.f32 %v946_v4, %v832_v6 }
 0x160   : > { %1427 = vmatmul.msk.f32.gmra.mxu3 %vm1004_vm4, %v982_v31 }
 0x161   : > { %v949_v7 = vpop.f32.mrf.mxu2 }
 0x163   : > { %v799_v8 = vpop.f32.mrf.mxu1 }
 0x164   : > { %v833_v10 = vmul.f32 %v799_v8, %v665_v34  ;;  %v1175_v34 = vld [vmem:[%s2274_s4 + $0x48] sm:$0xff] }
 0x166   : > { %v983_v11 = vmul.f32 %v949_v7, %v833_v10 }
 0x168   : > { %1428 = vmatmul.msk.f32.gmra.mxu3 %vm1004_vm4, %v983_v11 }
 0x169   : > { %v952_v12 = vpop.f32.mrf.mxu2 }
 0x16b   : > { %v802_v13 = vpop.f32.mrf.mxu1 }
 0x16c   : > { %v834_v14 = vmul.f32 %v802_v13, %v668_v38  ;;  %v1173_v38 = vld [vmem:[%s2274_s4 + $0x38] sm:$0xff] }
 0x16e   : > { %v984_v15 = vmul.f32 %v952_v12, %v834_v14 }
 0x170   : > { %1429 = vmatmul.msk.f32.gmra.mxu3 %vm1004_vm4, %v984_v15 }
 0x171   : > { %v955_v16 = vpop.f32.mrf.mxu2 }
 0x173   : > { %v805_v17 = vpop.f32.mrf.mxu1 }
 0x174   : > { %v835_v18 = vmul.f32 %v805_v17, %v2096_v20  ;;  %v1179_v20 = vld [vmem:[%s2274_s4 + $0x68] sm:$0xff] }
 0x175   : > { %1188 = vmatpush.msrb.mxu0 %v1179_v20 }
 0x176   : > { %v985_v19 = vmul.f32 %v955_v16, %v835_v18 }
 0x177   : > { %1189 = vmatpush.msrb.mxu0 %v1178_v27 }
 0x178   : > { %1430 = vmatmul.msk.f32.gmra.mxu3 %vm1004_vm4, %v985_v19 }
 0x179   : > { %v958_v22 = vpop.f32.mrf.mxu2  ;;  %1190 = vmatpush.msrb.mxu0 %v1177_v28 }
 0x17b   : > { %v808_v23 = vpop.f32.mrf.mxu1  ;;  %1191 = vmatpush.msrb.mxu0 %v1176_v30 }
 0x17c   : > { %v836_v24 = vmul.f32 %v808_v23, %v2106_v26 }
 0x17d   : > { %1192 = vmatpush.msrb.mxu0 %v1175_v34 }
 0x17e   : > { %v986_v25 = vmul.f32 %v958_v22, %v836_v24 }
 0x17f   : > { %1193 = vmatpush.msrb.mxu0 %v1174_v36 }
 0x180   : > { %1431 = vmatmul.msk.f32.gmra.mxu3 %vm1004_vm4, %v986_v25 }
 0x181   : > { %v961_v29 = vpop.f32.mrf.mxu2  ;;  %1194 = vmatpush.msrb.mxu0 %v1173_v38 }
 0x183   : > { %v811_v26 = vpop.f32.mrf.mxu1 }
 0x184   : > { %v837_v32 = vmul.f32 %v811_v26, %v2113_v33  ;;  %v1172_v33 = vld [vmem:[%s2274_s4 + $0x30] sm:$0xff] }
 0x185   : > { %1195 = vmatpush.msrb.mxu0 %v1172_v33 }
 0x186   : > { %v987_v35 = vmul.f32 %v961_v29, %v837_v32 }
 0x187   : > { %1196 = vmatpush.msrb.mxu0 %v1171_v41 }
 0x188   : > { %1432 = vmatmul.msk.f32.gmra.mxu3 %vm1004_vm4, %v987_v35 }
 0x189   : > { %v964_v39 = vpop.f32.mrf.mxu2  ;;  %1197 = vmatpush.msrb.mxu0 %v1170_v44 }
 0x18b   : > { %v814_v40 = vpop.f32.mrf.mxu1  ;;  %1198 = vmatpush.msrb.mxu0 %v1169_v46 }
 0x18c   : > { %v838_v42 = vmul.f32 %v814_v40, %v2119_v37  ;;  %v1168_v37 = vld [vmem:[%s2274_s4 + $0x10] sm:$0xff] }
 0x18d   : > { %1199 = vmatpush.msrb.mxu0 %v1168_v37 }
 0x18e   : > { %v988_v45 = vmul.f32 %v964_v39, %v838_v42 }
 0x18f   : > { %1200 = vmatpush.msrb.mxu0 %v1167_v51 }
 0x190   : > { %1433 = vmatmul.msk.f32.gmra.mxu3 %vm1004_vm4, %v988_v45 }
 0x191   : > { %v967_v47 = vpop.f32.mrf.mxu2  ;;  %1201 = vmatpush.msrb.mxu0 %v1166_v53 }
 0x193   : > { %v817_v48 = vpop.f32.mrf.mxu1 }
 0x194   : > { %v839_v49 = vmul.f32 %v817_v48, %v683_v43 }
 0x196   : > { %v989_v52 = vmul.f32 %v967_v47, %v839_v49 }
 0x198   : > { %1434 = vmatmul.msk.f32.gmra.mxu3 %vm1004_vm4, %v989_v52 }
 0x199   : > { %v970_v55 = vpop.f32.mrf.mxu2 }
 0x19b   : > { %v820_v56 = vpop.f32.mrf.mxu1 }
 0x19c   : > { %v840_v57 = vmul.f32 %v820_v56, %v686_v9 }
 0x19e   : > { %v990_v58 = vmul.f32 %v970_v55, %v840_v57 }
 0x1a0   : > { %1435 = vmatmul.msk.f32.gmra.mxu3 %vm1004_vm4, %v990_v58 }
 0x1a1   : > { %v973_v61 = vpop.f32.mrf.mxu2 }
 0x1a3   : > { %v823_v60 = vpop.f32.mrf.mxu1 }
 0x1a4   : > { %v841_v50 = vmul.f32 %v823_v60, %v689_v59 }
 0x1a6   : > { %v991_v62 = vmul.f32 %v973_v61, %v841_v50 }
 0x1a8   : > { %1436 = vmatmul.msk.f32.gmra.mxu3 %vm1004_vm4, %v991_v62 }
 0x1b3   : > { %v1070_v0 = vpop.f32.mrf.mxu3 }
 0x1b4   : > { %v1071_v1 = vadd.f32 %v2194_v63, %v1070_v0 }
 0x1b6   : > { %v1134_v2 = vmul.f32 0.25, %v1071_v1  ;;  %vm1118_vm9 = vcmp.gt.f32.partialorder %v1071_v1, 0.0 }
 0x1b8   : > { %v1150_v3 = vsel %vm1118_vm9, %v1071_v1, %v1134_v2  ;;  %v1490_v1 = vld [vmem:[%s2275_s5] ss:$0 sm:$0xff] }
 0x1b9   : > { %1202 = vmatmul.f32.vlgmr.msrb.gmra.mxu0 %v1150_v3 }
 0x1bb   : > { %v1073_v4 = vpop.f32.mrf.mxu3 }
 0x1bc   : > { %v1074_v5 = vadd.f32 %v2194_v63, %v1073_v4 }
 0x1be   : > { %vm1119_vm5 = vcmp.gt.f32.partialorder %v1074_v5, 0.0  ;;  %v1135_v6 = vmul.f32 0.25, %v1074_v5 }
 0x1c0   : > { %v1151_v31 = vsel %vm1119_vm5, %v1074_v5, %v1135_v6 }
 0x1c1   : > { %1205 = vmatmul.f32.gmra.mxu0 %v1151_v31 }
 0x1c3   : > { %v1076_v7 = vpop.f32.mrf.mxu3 }
 0x1c4   : > { %v1077_v8 = vadd.f32 %v2194_v63, %v1076_v7 }
 0x1c6   : > { %vm1120_vm6 = vcmp.gt.f32.partialorder %v1077_v8, 0.0  ;;  %v1136_v10 = vmul.f32 0.25, %v1077_v8 }
 0x1c8   : > { %v1152_v11 = vsel %vm1120_vm6, %v1077_v8, %v1136_v10 }
 0x1c9   : > { %1208 = vmatmul.f32.gmra.mxu0 %v1152_v11 }
 0x1cb   : > { %v1079_v12 = vpop.f32.mrf.mxu3 }
 0x1cc   : > { %v1080_v13 = vadd.f32 %v2194_v63, %v1079_v12 }
 0x1ce   : > { %vm1121_vm7 = vcmp.gt.f32.partialorder %v1080_v13, 0.0  ;;  %v1137_v14 = vmul.f32 0.25, %v1080_v13 }
 0x1d0   : > { %v1153_v15 = vsel %vm1121_vm7, %v1080_v13, %v1137_v14 }
 0x1d1   : > { %1211 = vmatmul.f32.gmra.mxu0 %v1153_v15 }
 0x1d3   : > { %v1082_v16 = vpop.f32.mrf.mxu3 }
 0x1d4   : > { %v1083_v17 = vadd.f32 %v2194_v63, %v1082_v16 }
 0x1d6   : > { %vm1122_vm8 = vcmp.gt.f32.partialorder %v1083_v17, 0.0  ;;  %v1138_v18 = vmul.f32 0.25, %v1083_v17 }
 0x1d8   : > { %v1154_v19 = vsel %vm1122_vm8, %v1083_v17, %v1138_v18 }
 0x1d9   : > { %1214 = vmatmul.f32.gmra.mxu0 %v1154_v19 }
 0x1db   : > { %v1085_v21 = vpop.f32.mrf.mxu3 }
 0x1dc   : > { %v1086_v22 = vadd.f32 %v2194_v63, %v1085_v21 }
 0x1de   : > { %vm1123_vm10 = vcmp.gt.f32.partialorder %v1086_v22, 0.0  ;;  %v1139_v23 = vmul.f32 0.25, %v1086_v22 }
 0x1e0   : > { %v1155_v54 = vsel %vm1123_vm10, %v1086_v22, %v1139_v23 }
 0x1e1   : > { %1217 = vmatmul.f32.gmra.mxu0 %v1155_v54 }
 0x1e3   : > { %v1088_v24 = vpop.f32.mrf.mxu3 }
 0x1e4   : > { %v1089_v20 = vadd.f32 %v2194_v63, %v1088_v24 }
 0x1e6   : > { %vm1124_vm11 = vcmp.gt.f32.partialorder %v1089_v20, 0.0  ;;  %v1140_v25 = vmul.f32 0.25, %v1089_v20 }
 0x1e8   : > { %v1156_v27 = vsel %vm1124_vm11, %v1089_v20, %v1140_v25 }
 0x1e9   : > { %1220 = vmatmul.f32.gmra.mxu0 %v1156_v27 }
 0x1eb   : > { %v1091_v28 = vpop.f32.mrf.mxu3 }
 0x1ec   : > { %v1092_v29 = vadd.f32 %v2194_v63, %v1091_v28 }
 0x1ee   : > { %vm1125_vm12 = vcmp.gt.f32.partialorder %v1092_v29, 0.0  ;;  %v1141_v26 = vmul.f32 0.25, %v1092_v29 }
 0x1f0   : > { %v1157_v30 = vsel %vm1125_vm12, %v1092_v29, %v1141_v26 }
 0x1f1   : > { %1223 = vmatmul.f32.gmra.mxu0 %v1157_v30 }
 0x1f3   : > { %v1094_v32 = vpop.f32.mrf.mxu3 }
 0x1f4   : > { %v1095_v34 = vadd.f32 %v2194_v63, %v1094_v32 }
 0x1f6   : > { %vm1126_vm13 = vcmp.gt.f32.partialorder %v1095_v34, 0.0  ;;  %v1142_v35 = vmul.f32 0.25, %v1095_v34 }
 0x1f8   : > { %v1158_v36 = vsel %vm1126_vm13, %v1095_v34, %v1142_v35 }
 0x1f9   : > { %1226 = vmatmul.f32.gmra.mxu0 %v1158_v36 }
 0x1fb   : > { %v1097_v38 = vpop.f32.mrf.mxu3 }
 0x1fc   : > { %v1098_v39 = vadd.f32 %v2194_v63, %v1097_v38 }
 0x1fe   : > { %vm1127_vm14 = vcmp.gt.f32.partialorder %v1098_v39, 0.0  ;;  %v1143_v33 = vmul.f32 0.25, %v1098_v39 }
 0x200   : > { %v1159_v40 = vsel %vm1127_vm14, %v1098_v39, %v1143_v33 }
 0x201   : > { %1229 = vmatmul.f32.gmra.mxu0 %v1159_v40 }
 0x203   : > { %v1100_v41 = vpop.f32.mrf.mxu3 }
 0x204   : > { %v1101_v42 = vadd.f32 %v2194_v63, %v1100_v41 }
 0x206   : > { %vm1128_vm15 = vcmp.gt.f32.partialorder %v1101_v42, 0.0  ;;  %v1144_v43 = vmul.f32 0.25, %v1101_v42 }
 0x208   : > { %v1160_v44 = vsel %vm1128_vm15, %v1101_v42, %v1144_v43 }
 0x209   : > { %1232 = vmatmul.f32.gmra.mxu0 %v1160_v44 }
 0x20b   : > { %v1103_v45 = vpop.f32.mrf.mxu3 }
 0x20c   : > { %v1104_v46 = vadd.f32 %v2194_v63, %v1103_v45 }
 0x20e   : > { %vm1129_vm0 = vcmp.gt.f32.partialorder %v1104_v46, 0.0  ;;  %v1145_v47 = vmul.f32 0.25, %v1104_v46 }
 0x210   : > { %v1161_v48 = vsel %vm1129_vm0, %v1104_v46, %v1145_v47 }
 0x211   : > { %1235 = vmatmul.f32.gmra.mxu0 %v1161_v48 }
 0x213   : > { %v1106_v37 = vpop.f32.mrf.mxu3 }
 0x214   : > { %v1107_v49 = vadd.f32 %v2194_v63, %v1106_v37 }
 0x216   : > { %vm1130_vm1 = vcmp.gt.f32.partialorder %v1107_v49, 0.0  ;;  %v1146_v51 = vmul.f32 0.25, %v1107_v49 }
 0x218   : > { %v1162_v52 = vsel %vm1130_vm1, %v1107_v49, %v1146_v51 }
 0x219   : > { %1238 = vmatmul.f32.gmra.mxu0 %v1162_v52 }
 0x21b   : > { %v1109_v53 = vpop.f32.mrf.mxu3 }
 0x21c   : > { %v1110_v9 = vadd.f32 %v2194_v63, %v1109_v53 }
 0x21e   : > { %vm1131_vm2 = vcmp.gt.f32.partialorder %v1110_v9, 0.0  ;;  %v1147_v55 = vmul.f32 0.25, %v1110_v9 }
 0x220   : > { %v1163_v56 = vsel %vm1131_vm2, %v1110_v9, %v1147_v55 }
 0x221   : > { %1241 = vmatmul.f32.gmra.mxu0 %v1163_v56 }
 0x223   : > { %v1112_v57 = vpop.f32.mrf.mxu3 }
 0x224   : > { %v1113_v58 = vadd.f32 %v2194_v63, %v1112_v57 }
 0x226   : > { %vm1132_vm3 = vcmp.gt.f32.partialorder %v1113_v58, 0.0  ;;  %v1148_v59 = vmul.f32 0.25, %v1113_v58 }
 0x228   : > { %v1164_v60 = vsel %vm1132_vm3, %v1113_v58, %v1148_v59 }
 0x229   : > { %1244 = vmatmul.f32.gmra.mxu0 %v1164_v60 }
 0x22b   : > { %v1115_v61 = vpop.f32.mrf.mxu3 }
 0x22c   : > { %v1116_v50 = vadd.f32 %v2194_v63, %v1115_v61 }
 0x22e   : > { %vm1133_vm4 = vcmp.gt.f32.partialorder %v1116_v50, 0.0  ;;  %v1149_v62 = vmul.f32 0.25, %v1116_v50 }
 0x230   : > { %v1165_v0 = vsel %vm1133_vm4, %v1116_v50, %v1149_v62 }
 0x231   : > { %1247 = vmatmul.f32.gmra.mxu0 %v1165_v0 }
 0x236   : > { %v1203_v2 = vpop.f32.mrf.mxu0 }
 0x237   : > { %v1204_v3 = vadd.f32 %v1490_v1, %v1203_v2 }
 0x239   : > { %1251 = vst [vmem:[%s2218_s16] sm:$0xff] %v1204_v3 }
 0x23e   : > { %v1206_v63 = vpop.f32.mrf.mxu0 }
 0x23f   : > { %v1207_v4 = vadd.f32 %v1490_v1, %v1206_v63 }
 0x241   : > { %1252 = vst [vmem:[%s2218_s16 + $0x8] sm:$0xff] %v1207_v4 }
 0x246   : > { %v1209_v5 = vpop.f32.mrf.mxu0 }
 0x247   : > { %v1210_v6 = vadd.f32 %v1490_v1, %v1209_v5 }
 0x249   : > { %1253 = vst [vmem:[%s2218_s16 + $0x10] sm:$0xff] %v1210_v6 }
 0x24e   : > { %v1212_v31 = vpop.f32.mrf.mxu0 }
 0x24f   : > { %v1213_v7 = vadd.f32 %v1490_v1, %v1212_v31 }
 0x251   : > { %1254 = vst [vmem:[%s2218_s16 + $0x18] sm:$0xff] %v1213_v7 }
 0x256   : > { %v1215_v8 = vpop.f32.mrf.mxu0 }
 0x257   : > { %v1216_v10 = vadd.f32 %v1490_v1, %v1215_v8 }
 0x259   : > { %1255 = vst [vmem:[%s2218_s16 + $0x20] sm:$0xff] %v1216_v10 }
 0x25e   : > { %v1218_v11 = vpop.f32.mrf.mxu0 }
 0x25f   : > { %v1219_v12 = vadd.f32 %v1490_v1, %v1218_v11 }
 0x261   : > { %1256 = vst [vmem:[%s2218_s16 + $0x28] sm:$0xff] %v1219_v12 }
 0x266   : > { %v1221_v13 = vpop.f32.mrf.mxu0 }
 0x267   : > { %v1222_v14 = vadd.f32 %v1490_v1, %v1221_v13 }
 0x269   : > { %1257 = vst [vmem:[%s2218_s16 + $0x30] sm:$0xff] %v1222_v14 }
 0x26e   : > { %v1224_v15 = vpop.f32.mrf.mxu0 }
 0x26f   : > { %v1225_v16 = vadd.f32 %v1490_v1, %v1224_v15 }
 0x271   : > { %1258 = vst [vmem:[%s2218_s16 + $0x38] sm:$0xff] %v1225_v16 }
 0x276   : > { %v1227_v17 = vpop.f32.mrf.mxu0 }
 0x277   : > { %v1228_v18 = vadd.f32 %v1490_v1, %v1227_v17 }
 0x279   : > { %1259 = vst [vmem:[%s2218_s16 + $0x40] sm:$0xff] %v1228_v18 }
 0x27e   : > { %v1230_v19 = vpop.f32.mrf.mxu0 }
 0x27f   : > { %v1231_v21 = vadd.f32 %v1490_v1, %v1230_v19 }
 0x281   : > { %1260 = vst [vmem:[%s2218_s16 + $0x48] sm:$0xff] %v1231_v21 }
 0x286   : > { %v1233_v22 = vpop.f32.mrf.mxu0 }
 0x287   : > { %v1234_v23 = vadd.f32 %v1490_v1, %v1233_v22 }
 0x289   : > { %1261 = vst [vmem:[%s2218_s16 + $0x50] sm:$0xff] %v1234_v23 }
 0x28e   : > { %v1236_v54 = vpop.f32.mrf.mxu0 }
 0x28f   : > { %v1237_v24 = vadd.f32 %v1490_v1, %v1236_v54 }
 0x291   : > { %1262 = vst [vmem:[%s2218_s16 + $0x58] sm:$0xff] %v1237_v24 }
 0x296   : > { %v1239_v20 = vpop.f32.mrf.mxu0 }
 0x297   : > { %v1240_v25 = vadd.f32 %v1490_v1, %v1239_v20 }
 0x299   : > { %1263 = vst [vmem:[%s2218_s16 + $0x60] sm:$0xff] %v1240_v25 }
 0x29e   : > { %v1242_v27 = vpop.f32.mrf.mxu0 }
 0x29f   : > { %v1243_v28 = vadd.f32 %v1490_v1, %v1242_v27 }
 0x2a1   : > { %1264 = vst [vmem:[%s2218_s16 + $0x68] sm:$0xff] %v1243_v28 }
 0x2a6   : > { %v1245_v29 = vpop.f32.mrf.mxu0 }
 0x2a7   : > { %v1246_v26 = vadd.f32 %v1490_v1, %v1245_v29 }
 0x2a9   : > { %1265 = vst [vmem:[%s2218_s16 + $0x70] sm:$0xff] %v1246_v26 }
 0x2ae   : > { %v1248_v30 = vpop.f32.mrf.mxu0 }
 0x2af   : > { %v1249_v32 = vadd.f32 %v1490_v1, %v1248_v30 }
 0x2b1   : > { %1266 = vst [vmem:[%s2218_s16 + $0x78] sm:$0xff] %v1249_v32 }
 0x2b2   : > { %1582 = shalt.err (!%p1579_p3)
}
 0x2b3   : > { %s1621_s12 = smov 128   ;;  %s1622_s16 = smov 8  }
 0x2b4   : > { %1446 = dma.vmem_to_hbm [thread:$0]  (%p1696_p5), %s1281_s26, 2048, %s1283_s28, %s1268_s29, %s1621_s12, %s1621_s12, %s1622_s16  }
 0x2b5 PF: > { %p1452_p4 = scmp.ge.s32.totalorder %s1617_s24, 2  ;;  %s1297_s17 = sand.u32 1, %s1605_s21  }
 0x2b6   : > { %s1298_s18 = scalar_lea.sflag [#allocation3], %s1297_s17 }
 0x2b7   : > { %p1449_p7 = pnand %p1452_p4, %p1700_p6 }
 0x2b9   : > { %p1450_p8 = pneg %p1449_p7 }
 0x2bb   : > { %1600 = dma.done.wait (%p1450_p8), %s1298_s18, 2048  }
 0x2bc   : > { %1602 = vsyncadd (%p1450_p8), %s1298_s18, 4294965248  ;;  %p16_p9 = scmp.ge.s32.totalorder %s1683_s27, 4   ;;  %s2315_s21 = smov %s1609_s22 }
 0x2bd   : > { %s2316_s22 = smov %s1613_s23  ;;  %s2317_s23 = smov %s1694_s30 }
 0x2be   : > { %s2318_s24 = smov %s1683_s27  ;;  %18 = sbr.rel (!%p16_p9) target bundleno = 3 (0x3), region = 81 }
 0x2c3   :  { %1304 = vsyncpa [#allocation3], 1 }
 0x2c4   :  { %1306 = vsyncpa [#allocation3 + $0x1], 1 }

</bundles_post_ra>
